<compile_context>
chip_gen: v5e
topology: v5e:2x2
jax: 0.10.0
libtpu: 0.0.40
codegen_flags: <defaults>
</compile_context>

<pallas_src>
import jax
import jax.numpy as jnp
from jax.experimental import pallas as pl
from jax.experimental.pallas import tpu as pltpu

HIDDEN = 32
TILE_B_MAX = 512  # states per grid step (multiple of 128, lane-dense)


def _round_up(n, m):
    return ((n + m - 1) // m) * m


def _valuenet_kernel(x_ref, p1_ref, p2_ref, p3_ref, o_ref):
    # x_ref : (D, TILE_B)     states, batch on lanes
    # p1_ref: (32, D + 1)     [W1 | b1]   (torch layout: W is (out, in))
    # p2_ref: (32, 33)        [W2 | b2]
    # p3_ref: (1, 33)         [W3 | b3]
    # o_ref : (1, TILE_B)     one value per state, lane-dense output
    d = x_ref.shape[0]
    x = x_ref[...]

    w1 = p1_ref[:, :d]
    b1 = p1_ref[:, d:d + 1]
    h1 = jnp.dot(w1, x, preferred_element_type=jnp.float32) + b1
    h1 = jnp.maximum(h1, 0.0)                                   # ReLU (VPU)

    w2 = p2_ref[:, :HIDDEN]
    b2 = p2_ref[:, HIDDEN:HIDDEN + 1]
    h2 = jnp.dot(w2, h1, preferred_element_type=jnp.float32) + b2
    h2 = jnp.maximum(h2, 0.0)                                   # ReLU (VPU)

    w3 = p3_ref[:, :HIDDEN]
    b3 = p3_ref[:, HIDDEN:HIDDEN + 1]
    out = jnp.dot(w3, h2, preferred_element_type=jnp.float32) + b3
    o_ref[...] = out.astype(o_ref.dtype)


@jax.jit
def value_net_apply(xs, params):
    """Batched forward: xs (B, stateDim) -> (B, 1) float32 values."""
    p1, p2, p3 = params
    b, d = xs.shape
    assert d == p1.shape[1] - 1, "state dimension mismatch"

    tile_b = min(TILE_B_MAX, _round_up(b, 128))
    b_pad = _round_up(b, tile_b)
    grid = b_pad // tile_b

    # Feature-major (D, B_pad); zero-pad extra lanes (they are discarded below).
    xt = xs.astype(jnp.float32).T
    if b_pad != b:
        xt = jnp.pad(xt, ((0, 0), (0, b_pad - b)))

    out = pl.pallas_call(
        _valuenet_kernel,
        out_shape=jax.ShapeDtypeStruct((1, b_pad), jnp.float32),
        grid_spec=pltpu.PrefetchScalarGridSpec(
            num_scalar_prefetch=0,
            grid=(grid,),
            in_specs=[
                pl.BlockSpec((d, tile_b), lambda g: (0, g)),   # states, tiled on lanes
                pl.BlockSpec(p1.shape, lambda g: (0, 0)),      # weights: same block
                pl.BlockSpec(p2.shape, lambda g: (0, 0)),      #   every step -> stay
                pl.BlockSpec(p3.shape, lambda g: (0, 0)),      #   VMEM-resident
            ],
            out_specs=pl.BlockSpec((1, tile_b), lambda g: (0, g)),
        ),
        compiler_params=pltpu.CompilerParams(
            dimension_semantics=("parallel",),                 # megacore split on v7x
        ),
    )(xt, p1, p2, p3)

    return out[0, :b].reshape(b, 1)


def value_net_forward(x, params):
    """Matches ValueNet.forward: 1-D state vector (stateDim,) -> (1,)."""
    assert x.ndim == 1 and x.shape[0] == params[0].shape[1] - 1
    return value_net_apply(x[None, :], params)[0]


def init_params(state_dim, key):
    """nn.Linear-style init U(-1/sqrt(fan_in), ...); bias packed as the last column."""
    keys = jax.random.split(key, 6)

    def packed_linear(kw, kb, fan_in, fan_out):
        bound = 1.0 / jnp.sqrt(jnp.float32(fan_in))
        w = jax.random.uniform(kw, (fan_out, fan_in), jnp.float32, -bound, bound)
        b = jax.random.uniform(kb, (fan_out, 1), jnp.float32, -bound, bound)
        return jnp.concatenate([w, b], axis=1)  # (fan_out, fan_in + 1) = [W | b]

    p1 = packed_linear(keys[0], keys[1], state_dim, HIDDEN)
    p2 = packed_linear(keys[2], keys[3], HIDDEN, HIDDEN)
    p3 = packed_linear(keys[4], keys[5], HIDDEN, 1)
    return (p1, p2, p3)


def _reference(xs, params):
    """Pure-JAX reference of the same math (row-vector convention)."""
    h = xs.astype(jnp.float32)
    for i, p in enumerate(params):
        w, bias = p[:, :-1], p[:, -1]
        h = h @ w.T + bias
        if i < 2:
            h = jnp.maximum(h, 0.0)
    return h


if __name__ == "__main__":
    state_dim = 8
    key = jax.random.PRNGKey(0)
    k_params, k_single, k_batch = jax.random.split(key, 3)

    params = init_params(state_dim, k_params)

    # Single-state path (same semantics as ValueNet.forward: (stateDim,) -> (1,)).
    x = jax.random.normal(k_single, (state_dim,), dtype=jnp.float32)
    y = value_net_forward(x, params)
    jax.block_until_ready(y)
    assert y.shape == (1,)
    assert jnp.allclose(y, _reference(x[None, :], params)[0], atol=1e-5, rtol=1e-5)

    # Small batched path (the perf-relevant entry point; amortizes launch + DMA).
    xs = jax.random.normal(k_batch, (16, state_dim), dtype=jnp.float32)
    ys = value_net_apply(xs, params)
    jax.block_until_ready(ys)
    assert ys.shape == (16, 1)
    assert jnp.allclose(ys, _reference(xs, params), atol=1e-5, rtol=1e-5)

    print("KERNEL_OK")
</pallas_src>

<mosaic_0001>
module attributes {stable_mosaic.version = 11 : i64} {
  func.func @_valuenet_kernel(%arg0: i32, %arg1: memref<8x128xf32, #tpu.memory_space<vmem>>, %arg2: memref<32x9xf32, #tpu.memory_space<vmem>>, %arg3: memref<32x33xf32, #tpu.memory_space<vmem>>, %arg4: memref<1x33xf32, #tpu.memory_space<vmem>>, %arg5: memref<1x128xf32, #tpu.memory_space<vmem>>) attributes {dimension_semantics = [#tpu.dimension_semantics<parallel>], iteration_bounds = array<i64: 1>, scalar_prefetch = 0 : i64, scratch_operands = 0 : i64, tpu.core_type = #tpu.core_type<tc>, window_params = [{transform_indices = @transform_0, window_bounds = array<i64: 8, 128>}, {pipeline_mode = #tpu.pipeline_mode<synchronous>, transform_indices = @transform_1, window_bounds = array<i64: 32, 9>}, {pipeline_mode = #tpu.pipeline_mode<synchronous>, transform_indices = @transform_2, window_bounds = array<i64: 32, 33>}, {pipeline_mode = #tpu.pipeline_mode<synchronous>, transform_indices = @transform_3, window_bounds = array<i64: 1, 33>}, {transform_indices = @transform_4, window_bounds = array<i64: 1, 128>}]} {
    %c0 = arith.constant 0 : index
    %c0_0 = arith.constant 0 : index
    %0 = vector.load %arg1[%c0, %c0_0] : memref<8x128xf32, #tpu.memory_space<vmem>>, vector<8x128xf32>
    %c0_1 = arith.constant 0 : index
    %c0_2 = arith.constant 0 : index
    %1 = vector.load %arg2[%c0_1, %c0_2] : memref<32x9xf32, #tpu.memory_space<vmem>>, vector<32x8xf32>
    %c0_3 = arith.constant 0 : index
    %c8 = arith.constant 8 : index
    %2 = vector.load %arg2[%c0_3, %c8] : memref<32x9xf32, #tpu.memory_space<vmem>>, vector<32x1xf32>
    %cst = arith.constant dense<0.000000e+00> : vector<32x128xf32>
    %3 = tpu.matmul %1, %0, %cst {dimension_numbers = #tpu.dot_dimension_numbers<[1], [0], [0], [1], [0, 0, 1, 1], [], []>} : vector<32x8xf32>, vector<8x128xf32>, vector<32x128xf32> -> vector<32x128xf32>
    %4 = vector.broadcast %2 : vector<32x1xf32> to vector<32x128xf32>
    %5 = arith.addf %3, %4 : vector<32x128xf32>
    %cst_4 = arith.constant 0.000000e+00 : f32
    %6 = vector.broadcast %cst_4 : f32 to vector<32x128xf32>
    %7 = arith.maximumf %5, %6 : vector<32x128xf32>
    %c0_5 = arith.constant 0 : index
    %c0_6 = arith.constant 0 : index
    %8 = vector.load %arg3[%c0_5, %c0_6] : memref<32x33xf32, #tpu.memory_space<vmem>>, vector<32x32xf32>
    %c0_7 = arith.constant 0 : index
    %c32 = arith.constant 32 : index
    %9 = vector.load %arg3[%c0_7, %c32] : memref<32x33xf32, #tpu.memory_space<vmem>>, vector<32x1xf32>
    %cst_8 = arith.constant dense<0.000000e+00> : vector<32x128xf32>
    %10 = tpu.matmul %8, %7, %cst_8 {dimension_numbers = #tpu.dot_dimension_numbers<[1], [0], [0], [1], [0, 0, 1, 1], [], []>} : vector<32x32xf32>, vector<32x128xf32>, vector<32x128xf32> -> vector<32x128xf32>
    %11 = vector.broadcast %9 : vector<32x1xf32> to vector<32x128xf32>
    %12 = arith.addf %10, %11 : vector<32x128xf32>
    %cst_9 = arith.constant 0.000000e+00 : f32
    %13 = vector.broadcast %cst_9 : f32 to vector<32x128xf32>
    %14 = arith.maximumf %12, %13 : vector<32x128xf32>
    %c0_10 = arith.constant 0 : index
    %c0_11 = arith.constant 0 : index
    %15 = vector.load %arg4[%c0_10, %c0_11] : memref<1x33xf32, #tpu.memory_space<vmem>>, vector<1x32xf32>
    %c0_12 = arith.constant 0 : index
    %c32_13 = arith.constant 32 : index
    %16 = vector.load %arg4[%c0_12, %c32_13] : memref<1x33xf32, #tpu.memory_space<vmem>>, vector<1x1xf32>
    %cst_14 = arith.constant dense<0.000000e+00> : vector<1x128xf32>
    %17 = tpu.matmul %15, %14, %cst_14 {dimension_numbers = #tpu.dot_dimension_numbers<[1], [0], [0], [1], [0, 0, 1, 1], [], []>} : vector<1x32xf32>, vector<32x128xf32>, vector<1x128xf32> -> vector<1x128xf32>
    %18 = vector.broadcast %16 : vector<1x1xf32> to vector<1x128xf32>
    %19 = arith.addf %17, %18 : vector<1x128xf32>
    %c0_15 = arith.constant 0 : index
    %c0_16 = arith.constant 0 : index
    %20 = vector.load %arg5[%c0_15, %c0_16] : memref<1x128xf32, #tpu.memory_space<vmem>>, vector<1x128xf32>
    tpu.vector_store %arg5[%c0_15, %c0_16], %19 {strides = array<i32>} : memref<1x128xf32, #tpu.memory_space<vmem>>, vector<1x128xf32>,
    return
  }
  func.func @transform_0(%arg0: i32) -> (i32, i32) {
    %c0_i32 = arith.constant 0 : i32
    %c0_i32_0 = arith.constant 0 : i32
    return %c0_i32, %arg0 : i32, i32
  }
  func.func @transform_1(%arg0: i32) -> (i32, i32) {
    %c0_i32 = arith.constant 0 : i32
    %c0_i32_0 = arith.constant 0 : i32
    %c0_i32_1 = arith.constant 0 : i32
    return %c0_i32, %c0_i32_0 : i32, i32
  }
  func.func @transform_2(%arg0: i32) -> (i32, i32) {
    %c0_i32 = arith.constant 0 : i32
    %c0_i32_0 = arith.constant 0 : i32
    %c0_i32_1 = arith.constant 0 : i32
    return %c0_i32, %c0_i32_0 : i32, i32
  }
  func.func @transform_3(%arg0: i32) -> (i32, i32) {
    %c0_i32 = arith.constant 0 : i32
    %c0_i32_0 = arith.constant 0 : i32
    %c0_i32_1 = arith.constant 0 : i32
    return %c0_i32, %c0_i32_0 : i32, i32
  }
  func.func @transform_4(%arg0: i32) -> (i32, i32) {
    %c0_i32 = arith.constant 0 : i32
    %c0_i32_0 = arith.constant 0 : i32
    return %c0_i32, %arg0 : i32, i32
  }
}

</mosaic_0001>

<bundles_post_ra>
// kernel: value_net_apply.1
= control target key start
LH: loop header
LB: loop body
LE: loop exit
PB: predicated region body
PF: predicated region fallthrough
CT: control target
= control target key end

     0   :  { %vm43_vm0 = vcmask 64512   ;;  %s315_s0 = inlined_call_operand.vmem [shape: f32[8,128], index: 0, kind: input, shape index: {}]   ;;  %s316_s1 = inlined_call_operand.vmem [shape: f32[32,9], index: 1, kind: input, shape index: {}]   ;;  %s317_s2 = inlined_call_operand.vmem [shape: f32[32,33], index: 2, kind: input, shape index: {}]   ;;  %s318_s3 = inlined_call_operand.vmem [shape: f32[1,33], index: 3, kind: input, shape index: {}]   ;;  %s319_s4 = inlined_call_operand.hbm [shape: f32[1,128], index: 4, kind: output, shape index: {}]  }
   0x1   :  { %v18_v0 = vld [vmem:[%s315_s0] sm:$0xff]  ;;  %v22_v2 = vld [vmem:[%s316_s1 + $0x18] sm:$0xff]  ;;  %v20_v3 = vld [vmem:[%s316_s1 + $0x8] sm:$0xff] }
   0x2   :  { %v19_v1 = vld [vmem:[%s316_s1] sm:$0xff]  ;;  %67 = vmatpush.msra.mxu0 %v18_v0  ;;  %206 = vmatpush.msra.mxu2 %v18_v0 }
   0x3   :  { %9 = vsyncpa [#allocation3], 0  ;;  %197 = vmatmul.msk.f32.vlgmr.msra.gmra.mxu0 %vm43_vm0, %v19_v1  ;;  %v245_v4 = vmov 8   ;;  %200 = vmatmul.msk.f32.vlgmr.msra.gmra.mxu2 %vm43_vm0, %v22_v2  ;;  %v21_v5 = vld [vmem:[%s316_s1 + $0x10] sm:$0xff]  ;;  %v88_v7 = vld [vmem:[%s317_s2 + $0x18] sm:$0xff]  ;;  %v246_v9 = vmov 32  }
   0x4   :  { %215 = vset.pattern.permute.xlu1 %v245_v4  ;;  %214 = vset.pattern.permute.xlu0 %v245_v4  ;;  %v85_v8 = vld [vmem:[%s317_s2] sm:$0xff]  ;;  %v86_v11 = vld [vmem:[%s317_s2 + $0x8] sm:$0xff]  ;;  %v87_v17 = vld [vmem:[%s317_s2 + $0x10] sm:$0xff]  ;;  %vm109_vm1 = vcmask 261120   ;;  %s247_s2 = smov [#allocation2]   ;;  %s188_s9 = sshll.u32 %s319_s4, 4  ;;  %s189_s9 = int_to_ptr.hbm [resolvable:$true] %s188_s9 }
   0x5   :  { %30 = vperm.xlu1 %215, %v20_v3   ;;  %40 = vperm.xlu0 %214, %v22_v2   ;;  %v151_v25 = vld [vmem:[%s318_s3] sm:$0x1]  ;;  %s186_s3 = sshll.u32 %s247_s2, 4  ;;  %s187_s3 = int_to_ptr.vmem [resolvable:$true] %s186_s3 }
   0x6   :  { %216 = vset.pattern.permute.xlu2 %v246_v9 }
   0x7   :  { %106 = vperm.xlu2 %216, %v88_v7  }
   0xb   :  { %198 = vmatmul.msk.f32.gmra.mxu0 %vm43_vm0, %v20_v3 }
   0xd   :  { %25 = vperm.xlu1 %215, %v19_v1   ;;  %35 = vperm.xlu0 %214, %v21_v5  }
   0xf   :  { %101 = vperm.xlu2 %216, %v87_v17  }
  0x13   :  { %199 = vmatmul.msk.f32.gmra.mxu0 %vm43_vm0, %v21_v5 }
  0x15   :  { %218 = vset.pattern.permute.xlu1 %v246_v9  ;;  %217 = vset.pattern.permute.xlu0 %v246_v9 }
  0x16   :  { %91 = vperm.xlu1 %218, %v85_v8   ;;  %96 = vperm.xlu0 %217, %v86_v11  }
  0x17   :  { %154 = vperm.xlu2 %216, %v151_v25  }
  0x61   :  { %v107_v29 = vpop.permute.xlu2 %106 }
  0x69   :  { %v102_v33 = vpop.permute.xlu2 %101 }
  0x71   :  { %v155_v44 = vpop.permute.xlu2 %154 }
  0x72   :  { %v157_v45 = vperm.slane %v155_v44, 0 }
  0x77   :  { %v31_v10 = vpop.permute.xlu1 %30  ;;  %v41_v12 = vpop.permute.xlu0 %40 }
  0x7f   :  { %v26_v18 = vpop.permute.xlu1 %25  ;;  %v36_v19 = vpop.permute.xlu0 %35 }
  0x80   :  { %v69_v6 = vpop.f32.mrf.mxu0 }
  0x81   :  { %v70_v23 = vadd.f32 %v69_v6, %v26_v18 }
  0x83   :  { %v81_v27 = vmax.f32 %v70_v23, 0.0 }
  0x86   :  { %v78_v13 = vpop.f32.mrf.mxu2 }
  0x87   :  { %v79_v15 = vadd.f32 %v78_v13, %v41_v12 }
  0x88   :  { %v72_v14 = vpop.f32.mrf.mxu0  ;;  %v97_v31 = vpop.permute.xlu0 %96 }
  0x89   :  { %v84_v16 = vmax.f32 %v79_v15, 0.0  ;;  %v73_v21 = vadd.f32 %v72_v14, %v31_v10  ;;  %v92_v38 = vpop.permute.xlu1 %91 }
  0x8b   :  { %130 = vmatpush.msra.mxu1 %v84_v16  ;;  %207 = vmatpush.msra.mxu3 %v84_v16  ;;  %v82_v26 = vmax.f32 %v73_v21, 0.0 }
  0x90   :  { %v75_v20 = vpop.f32.mrf.mxu0 }
  0x91   :  { %v76_v22 = vadd.f32 %v75_v20, %v36_v19 }
  0x93   :  { %v83_v24 = vmax.f32 %v76_v22, 0.0 }
  0x95   :  { %131 = vmatpush.msra.mxu1 %v83_v24  ;;  %208 = vmatpush.msra.mxu3 %v83_v24 }
  0x97   :  { %132 = vmatpush.msra.mxu1 %v82_v26  ;;  %209 = vmatpush.msra.mxu3 %v82_v26 }
  0x99   :  { %133 = vmatpush.msra.mxu1 %v81_v27  ;;  %210 = vmatpush.msra.mxu3 %v81_v27 }
  0x9a   :  { %203 = vmatmul.msk.f32.vlgmr.msra.gmra.mxu3 %vm109_vm1, %v87_v17  ;;  %201 = vmatmul.msk.f32.vlgmr.msra.gmra.mxu1 %vm109_vm1, %v85_v8 }
  0xa2   :  { %204 = vmatmul.msk.f32.gmra.mxu3 %vm109_vm1, %v88_v7  ;;  %202 = vmatmul.msk.f32.gmra.mxu1 %vm109_vm1, %v86_v11 }
 0x117   :  { %v135_v28 = vpop.f32.mrf.mxu1 }
 0x118   :  { %v136_v41 = vadd.f32 %v135_v28, %v92_v38 }
 0x11a   :  { %v147_v43 = vmax.f32 %v136_v41, 0.0 }
 0x11d   :  { %v141_v30 = vpop.f32.mrf.mxu3 }
 0x11e   :  { %v142_v35 = vadd.f32 %v141_v30, %v102_v33 }
 0x11f   :  { %v138_v32 = vpop.f32.mrf.mxu1 }
 0x120   :  { %v139_v37 = vadd.f32 %v138_v32, %v97_v31  ;;  %v149_v40 = vmax.f32 %v142_v35, 0.0 }
 0x122   :  { %v148_v42 = vmax.f32 %v139_v37, 0.0 }
 0x125   :  { %v144_v34 = vpop.f32.mrf.mxu3 }
 0x126   :  { %v145_v36 = vadd.f32 %v144_v34, %v107_v29 }
 0x128   :  { %v150_v39 = vmax.f32 %v145_v36, 0.0 }
 0x12a   :  { %172 = vmatpush.msrb.mxu2 %v150_v39 }
 0x12c   :  { %173 = vmatpush.msrb.mxu2 %v149_v40 }
 0x12e   :  { %174 = vmatpush.msrb.mxu2 %v148_v42 }
 0x130   :  { %175 = vmatpush.msrb.mxu2 %v147_v43 }
 0x131   :  { %205 = vmatmul.msk.f32.vlgmr.msrb.gmra.mxu2 %vm109_vm1, %v151_v25 }
 0x1b4   :  { %v177_v46 = vpop.f32.mrf.mxu2 }
 0x1b5   :  { %v178_v47 = vadd.f32 %v177_v46, %v157_v45 }
 0x1b7   :  { %180 = vst [vmem:[#allocation2] sm:$0x1] %v178_v47 }
 0x1b8   :  { %191 = dma.vmem_to_hbm [thread:$0]  %s187_s3, 16, %s189_s9, [#allocation3]  }
 0x1b9   :  { %243 = dma.done.wait [#allocation3], 16  }
 0x1ba   :  { %244 = vsyncadd [#allocation3], 4294967280 }
 0x1bb   :  { %196 = vsyncpa [#allocation3], 1 }

</bundles_post_ra>
